<compile_context>
chip_gen: v5e
topology: v5e:2x2
jax: 0.10.0
libtpu: 0.0.40
codegen_flags: <defaults>
</compile_context>

<pallas_src>
from functools import partial

import numpy as np
import jax
import jax.numpy as jnp
from jax.experimental import pallas as pl
from jax.experimental.pallas import tpu as pltpu

LANE = 128
_SUBLANE = 8
_CLIP = 1.0 - 1e-6
_MAX_BLOCK_N = 65536                 # examples per grid step (multiple of 1024)
_MIN_BLOCK_N = _SUBLANE * LANE       # 1024 = one (8,128) vreg of examples


def _round_up(x, m):
    return ((x + m - 1) // m) * m


def _cdiv(a, b):
    return (a + b - 1) // b


def _snap(c, tol=1e-9):
    """Snap near-0/+-1 symmetry-op entries to exact constants."""
    c = float(c)
    if abs(c) < tol:
        return 0.0
    if abs(c - 1.0) < tol:
        return 1.0
    if abs(c + 1.0) < tol:
        return -1.0
    return c


def _make_trace_kernel(sgops_np, with_sgnums):
    """Build a kernel with the symmetry-op table baked in as compile-time constants.

    sgops_np: (Nsym, Nop, 3, 3) numpy array (known at Loss construction).
    Kernel refs:
      m_ref, g_ref: (9, SB, 128)  row-major flattened 3x3, batch on (sublane, lane)
      s_ref:        (SB, 128)     int32 space-group index per example (sym path only)
      o_ref:        (SB, 128)     clip(0.5 * max_op trace_op - 0.5) per example
    """
    sgops_np = np.asarray(sgops_np, dtype=np.float64)
    nsym, nop = sgops_np.shape[0], sgops_np.shape[1]

    # Snap constants and deduplicate ops globally across space groups: each
    # unique op's trace is computed once and shared by every group using it
    # (the identity padding produces heavy duplication).
    uniq_index = {}
    uniq_mats = []
    group_op_ids = []
    for s in range(nsym):
        ids = []
        for op in range(nop):
            R = np.array([[_snap(sgops_np[s, op, k, j]) for j in range(3)]
                          for k in range(3)], dtype=np.float64)
            key = tuple(np.round(R.ravel(), 12).tolist())
            if key not in uniq_index:
                uniq_index[key] = len(uniq_mats)
                uniq_mats.append(R)
            idx = uniq_index[key]
            if idx not in ids:
                ids.append(idx)
        group_op_ids.append(ids)

    # Only the (k, j) entries of (M^T G) referenced by some op are computed.
    needed = sorted({(k, j) for R in uniq_mats for k in range(3) for j in range(3)
                     if R[k, j] != 0.0})

    def body(m_ref, g_ref, s_ref, o_ref):
        sub_block = o_ref.shape[0]
        n_chunks = sub_block // _SUBLANE

        # One (8, 128) vreg row-chunk per iteration: whole working set fits the
        # vreg file, no (sub_block, 128) intermediates spilled to VMEM.
        @pl.loop(0, n_chunks)
        def _(t):
            base = pl.multiple_of(t * _SUBLANE, _SUBLANE)
            rows = pl.ds(base, _SUBLANE)
            M = [m_ref[c, rows, :] for c in range(9)]     # M[i*3+k] = M[i, k]
            G = [g_ref[c, rows, :] for c in range(9)]     # G[i*3+j] = G[i, j]

            # D[(k, j)] = (M^T G)[k, j] = sum_i M[i, k] * G[i, j]   (per example)
            D = {}
            for (k, j) in needed:
                D[(k, j)] = (M[0 * 3 + k] * G[0 * 3 + j]
                             + M[1 * 3 + k] * G[1 * 3 + j]
                             + M[2 * 3 + k] * G[2 * 3 + j])

            # trace(M R G^T) = sum_{k,j} R[k,j] * D[k,j]; R entries are constants.
            traces = []
            for R in uniq_mats:
                tr = None
                for k in range(3):
                    for j in range(3):
                        c = R[k, j]
                        if c == 0.0:
                            continue
                        if c == 1.0:
                            term = D[(k, j)]
                        elif c == -1.0:
                            term = -D[(k, j)]
                        else:
                            term = c * D[(k, j)]
                        tr = term if tr is None else tr + term
                if tr is None:                      # all-zero op (never in practice)
                    tr = jnp.zeros((_SUBLANE, LANE), jnp.float32)
                traces.append(tr)

            # Per-group max over its (deduplicated) ops.
            best_per_sym = []
            for ids in group_op_ids:
                b = traces[ids[0]]
                for idx in ids[1:]:
                    b = jnp.maximum(b, traces[idx])
                best_per_sym.append(b)

            if with_sgnums and nsym > 1:
                sgn = s_ref[rows, :]                # (8, 128) int32
                result = best_per_sym[0]
                for s in range(1, nsym):
                    result = jnp.where(sgn == s, best_per_sym[s], result)
            else:
                result = best_per_sym[0]

            result = 0.5 * result - 0.5
            o_ref[rows, :] = jnp.clip(result, -_CLIP, _CLIP)

    if with_sgnums:
        def kernel(m_ref, g_ref, s_ref, o_ref):
            body(m_ref, g_ref, s_ref, o_ref)
    else:
        def kernel(m_ref, g_ref, o_ref):
            body(m_ref, g_ref, None, o_ref)
    return kernel


def _choose_blocking(N, max_block_n):
    """Pick (block_n, grid_steps): blocks as large as possible (amortize the fixed
    per-step overhead), but at least 2 grid steps when there is enough work so the
    'parallel' axis can shard across v7x's two TensorCores."""
    g = max(1, _cdiv(N, max_block_n))
    if g == 1 and N > _MIN_BLOCK_N:
        g = 2
    block_n = _round_up(_cdiv(N, g), _MIN_BLOCK_N)
    block_n = max(min(block_n, max_block_n), _MIN_BLOCK_N)
    return block_n, g


def _orientation_clipped_max_trace(kernel, model_rots9, gt_rots9, sgnums_i32,
                                   max_block_n=_MAX_BLOCK_N):
    """model_rots9, gt_rots9: (N, 9); sgnums_i32: (N,) int32 or None.
    Returns (N,) of clip(0.5 * max_op trace_op - 0.5)."""
    N = model_rots9.shape[0]
    block_n, g = _choose_blocking(N, max_block_n)
    npad = block_n * g
    nsub = npad // LANE
    sub_block = block_n // LANE                      # multiple of 8
    pad = npad - N

    def to_soa(x):
        # (N, 9) AoS -> (9, nsub, 128) SoA.  Under jit the transpose+pad+reshape
        # fuse into a single copy; f32 inputs skip the astype entirely.
        x = x if x.dtype == jnp.float32 else x.astype(jnp.float32)
        x = jnp.transpose(x, (1, 0))
        if pad:
            x = jnp.pad(x, ((0, 0), (0, pad)))
        return x.reshape(9, nsub, LANE)

    args = [to_soa(model_rots9), to_soa(gt_rots9)]
    in_specs = [pl.BlockSpec((9, sub_block, LANE), lambda i: (0, i, 0)),
                pl.BlockSpec((9, sub_block, LANE), lambda i: (0, i, 0))]
    if sgnums_i32 is not None:
        sg = sgnums_i32 if sgnums_i32.dtype == jnp.int32 else sgnums_i32.astype(jnp.int32)
        if pad:
            sg = jnp.pad(sg, ((0, pad),))
        args.append(sg.reshape(nsub, LANE))
        in_specs.append(pl.BlockSpec((sub_block, LANE), lambda i: (i, 0)))

    out = pl.pallas_call(
        kernel,
        out_shape=jax.ShapeDtypeStruct((nsub, LANE), jnp.float32),
        grid_spec=pltpu.PrefetchScalarGridSpec(
            num_scalar_prefetch=0,
            grid=(g,),
            in_specs=in_specs,
            out_specs=pl.BlockSpec((sub_block, LANE), lambda i: (i, 0)),
        ),
        compiler_params=pltpu.CompilerParams(
            dimension_semantics=("parallel",)),
    )(*args)
    return out.reshape(npad)[:N]


@partial(jax.jit, static_argnums=(0,), static_argnames=("reduce", "max_block_n"))
def _forward(kernel, model_rots, gt_rots, sgnums, reduce=True,
             max_block_n=_MAX_BLOCK_N):
    N = model_rots.shape[0]
    t = _orientation_clipped_max_trace(
        kernel, model_rots.reshape(N, 9), gt_rots.reshape(N, 9), sgnums,
        max_block_n=max_block_n)                     # (N,)
    # TODO(synk): arccos has no guaranteed Mosaic TPU lowering, so it is applied on
    # the tiny (N,) result here; under this jit it fuses with the mean into a single
    # pass.  The in-kernel max-over-ops of the clamped traces is exactly equivalent
    # to the module's min-over-ops of arccos (monotonicity).
    l = jnp.arccos(t)
    if reduce:
        l = jnp.mean(l)
    return l


class Loss:
    """JAX/Pallas port of utils.orientation.Loss (forward pass)."""

    def __init__(self, sgop_table, pdb_id_to_num, dev=None):
        self.Nop = max(len(v) for v in sgop_table.values())
        self.Nsym = len(sgop_table)
        sgops = np.zeros((self.Nsym, self.Nop, 3, 3), dtype=np.float32)
        sgops[:, :] = np.eye(3, dtype=np.float32)
        for pdb_id in sgop_table:
            r = np.asarray(sgop_table[pdb_id], dtype=np.float32)
            idx = pdb_id_to_num[pdb_id]
            sgops[idx, : len(r)] = r
        self.sgops = jnp.asarray(sgops)
        # Symmetry-op table is a construction-time constant: bake it into the kernel
        # (zero HBM traffic for the ops; no per-example gather/transpose/pad).
        self._sym_kernel = _make_trace_kernel(sgops, with_sgnums=True)
        self._plain_kernel = _make_trace_kernel(
            np.eye(3, dtype=np.float32)[None, None], with_sgnums=False)
        self._max_block_n = _MAX_BLOCK_N

    def __call__(self, model_rots, gt_rots, reduce=True, sgnums=None):
        if sgnums is not None:
            sg = jnp.asarray(sgnums)
            sg = sg if sg.dtype == jnp.int32 else sg.astype(jnp.int32)
            return _forward(self._sym_kernel, model_rots, gt_rots, sg,
                            reduce=reduce, max_block_n=int(self._max_block_n))
        # sgnums=None path: identity-only kernel; no sgnums HBM traffic at all.
        return _forward(self._plain_kernel, model_rots, gt_rots, None,
                        reduce=reduce, max_block_n=int(self._max_block_n))


# ----------------------------- pure-JAX reference ------------------------------
def _ref_loss(sgops, model_rots, gt_rots, reduce=True, sgnums=None):
    N = model_rots.shape[0]
    M = model_rots.reshape(N, 3, 3)
    G = jnp.swapaxes(gt_rots.reshape(N, 3, 3), 1, 2)
    if sgnums is not None:
        R = sgops[sgnums]
        Mop = jnp.matmul(M[:, None], R)
        mp = jnp.matmul(Mop, G[:, None])
        tr = 0.5 * jnp.trace(mp, axis1=2, axis2=3) - 0.5
        l = jnp.arccos(jnp.clip(tr, -_CLIP, _CLIP)).min(axis=1)
    else:
        mp = jnp.matmul(M, G)
        tr = 0.5 * jnp.trace(mp, axis1=1, axis2=2) - 0.5
        l = jnp.arccos(jnp.clip(tr, -_CLIP, _CLIP))
    if reduce:
        l = jnp.mean(l)
    return l


# ----------------------------- deterministic inputs ----------------------------
def _rot_z(deg):
    t = np.deg2rad(deg)
    return np.array([[np.cos(t), -np.sin(t), 0.0],
                     [np.sin(t), np.cos(t), 0.0],
                     [0.0, 0.0, 1.0]], dtype=np.float32)


def _random_rotations(key, n):
    k1, k2 = jax.random.split(key)
    axis = jax.random.normal(k1, (n, 3))
    axis = axis / jnp.linalg.norm(axis, axis=1, keepdims=True)
    ang = jax.random.uniform(k2, (n,), minval=0.2, maxval=3.0)
    c = jnp.cos(ang)[:, None, None]
    s = jnp.sin(ang)[:, None, None]
    x, y, z = axis[:, 0], axis[:, 1], axis[:, 2]
    zeros = jnp.zeros_like(x)
    K = jnp.stack([jnp.stack([zeros, -z, y], -1),
                   jnp.stack([z, zeros, -x], -1),
                   jnp.stack([-y, x, zeros], -1)], axis=1)
    I = jnp.eye(3)[None]
    return (I + s * K + (1.0 - c) * (K @ K)).astype(jnp.float32)


if __name__ == "__main__":
    sgop_table = {
        "P1": [np.eye(3, dtype=np.float32)],
        "P2": [np.eye(3, dtype=np.float32), _rot_z(180.0)],
        "P4": [np.eye(3, dtype=np.float32), _rot_z(90.0), _rot_z(180.0), _rot_z(270.0)],
    }
    pdb_id_to_num = {"P1": 0, "P2": 1, "P4": 2}

    loss_mod = Loss(sgop_table, pdb_id_to_num)

    key = jax.random.PRNGKey(0)
    kq, kg, ks = jax.random.split(key, 3)
    N = 8
    model_rots = _random_rotations(kq, N)                 # (8, 3, 3)
    gt_rots = _random_rotations(kg, N).reshape(N, 9)      # (8, 9)
    sgnums = jax.random.randint(ks, (N,), 0, 3)           # (8,)

    out_sym = loss_mod(model_rots, gt_rots, reduce=True, sgnums=sgnums)
    out_sym_per = loss_mod(model_rots, gt_rots, reduce=False, sgnums=sgnums)
    out_plain = loss_mod(model_rots, gt_rots, reduce=True, sgnums=None)
    jax.block_until_ready((out_sym, out_sym_per, out_plain))

    ref_sym = _ref_loss(loss_mod.sgops, model_rots, gt_rots, True, sgnums)
    ref_sym_per = _ref_loss(loss_mod.sgops, model_rots, gt_rots, False, sgnums)
    ref_plain = _ref_loss(loss_mod.sgops, model_rots, gt_rots, True, None)

    assert out_sym_per.shape == (N,)
    assert jnp.allclose(out_sym, ref_sym, atol=1e-3), (out_sym, ref_sym)
    assert jnp.allclose(out_sym_per, ref_sym_per, atol=1e-3)
    assert jnp.allclose(out_plain, ref_plain, atol=1e-3), (out_plain, ref_plain)

    # Multi-block grid check: N=1500 > 1024 -> the blocking auto-splits into 2
    # grid steps (block_n=1024) with a ragged, padded tail.
    kq2, kg2, ks2 = jax.random.split(jax.random.PRNGKey(1), 3)
    N2 = 1500
    model_rots2 = _random_rotations(kq2, N2)
    gt_rots2 = _random_rotations(kg2, N2).reshape(N2, 9)
    sgnums2 = jax.random.randint(ks2, (N2,), 0, 3)
    out2 = loss_mod(model_rots2, gt_rots2, reduce=False, sgnums=sgnums2)
    jax.block_until_ready(out2)
    ref2 = _ref_loss(loss_mod.sgops, model_rots2, gt_rots2, False, sgnums2)
    assert out2.shape == (N2,)
    assert jnp.allclose(out2, ref2, atol=1e-3)

    print("KERNEL_OK")
</pallas_src>

<mosaic_0001>
module attributes {stable_mosaic.version = 11 : i64} {
  func.func @kernel(%arg0: i32, %arg1: memref<9x8x128xf32, #tpu.memory_space<vmem>>, %arg2: memref<9x8x128xf32, #tpu.memory_space<vmem>>, %arg3: memref<8x128xi32, #tpu.memory_space<vmem>>, %arg4: memref<8x128xf32, #tpu.memory_space<vmem>>) attributes {dimension_semantics = [#tpu.dimension_semantics<parallel>], iteration_bounds = array<i64: 1>, scalar_prefetch = 0 : i64, scratch_operands = 0 : i64, tpu.core_type = #tpu.core_type<tc>, window_params = [{transform_indices = @transform_0, window_bounds = array<i64: 9, 8, 128>}, {transform_indices = @transform_1, window_bounds = array<i64: 9, 8, 128>}, {transform_indices = @transform_2, window_bounds = array<i64: 8, 128>}, {transform_indices = @transform_3, window_bounds = array<i64: 8, 128>}]} {
    %c0_i32 = arith.constant 0 : i32
    %c1_i32 = arith.constant 1 : i32
    %0 = arith.muli %c0_i32, %c1_i32 : i32
    %c0_i32_0 = arith.constant 0 : i32
    %1 = arith.addi %c0_i32_0, %0 : i32
    %c8_i32 = arith.constant 8 : i32
    %2 = arith.muli %1, %c8_i32 : i32
    %3 = tpu.assume_multiple %2, 8 : i32
    %c0 = arith.constant 0 : index
    %4 = arith.index_cast %3 : i32 to index
    %c0_1 = arith.constant 0 : index
    %5 = vector.load %arg1[%c0, %4, %c0_1] : memref<9x8x128xf32, #tpu.memory_space<vmem>>, vector<1x8x128xf32>
    %6 = vector.shape_cast %5 : vector<1x8x128xf32> to vector<8x128xf32>
    %c1 = arith.constant 1 : index
    %7 = arith.index_cast %3 : i32 to index
    %c0_2 = arith.constant 0 : index
    %8 = vector.load %arg1[%c1, %7, %c0_2] : memref<9x8x128xf32, #tpu.memory_space<vmem>>, vector<1x8x128xf32>
    %9 = vector.shape_cast %8 : vector<1x8x128xf32> to vector<8x128xf32>
    %c2 = arith.constant 2 : index
    %10 = arith.index_cast %3 : i32 to index
    %c0_3 = arith.constant 0 : index
    %11 = vector.load %arg1[%c2, %10, %c0_3] : memref<9x8x128xf32, #tpu.memory_space<vmem>>, vector<1x8x128xf32>
    %12 = vector.shape_cast %11 : vector<1x8x128xf32> to vector<8x128xf32>
    %c3 = arith.constant 3 : index
    %13 = arith.index_cast %3 : i32 to index
    %c0_4 = arith.constant 0 : index
    %14 = vector.load %arg1[%c3, %13, %c0_4] : memref<9x8x128xf32, #tpu.memory_space<vmem>>, vector<1x8x128xf32>
    %15 = vector.shape_cast %14 : vector<1x8x128xf32> to vector<8x128xf32>
    %c4 = arith.constant 4 : index
    %16 = arith.index_cast %3 : i32 to index
    %c0_5 = arith.constant 0 : index
    %17 = vector.load %arg1[%c4, %16, %c0_5] : memref<9x8x128xf32, #tpu.memory_space<vmem>>, vector<1x8x128xf32>
    %18 = vector.shape_cast %17 : vector<1x8x128xf32> to vector<8x128xf32>
    %c5 = arith.constant 5 : index
    %19 = arith.index_cast %3 : i32 to index
    %c0_6 = arith.constant 0 : index
    %20 = vector.load %arg1[%c5, %19, %c0_6] : memref<9x8x128xf32, #tpu.memory_space<vmem>>, vector<1x8x128xf32>
    %21 = vector.shape_cast %20 : vector<1x8x128xf32> to vector<8x128xf32>
    %c6 = arith.constant 6 : index
    %22 = arith.index_cast %3 : i32 to index
    %c0_7 = arith.constant 0 : index
    %23 = vector.load %arg1[%c6, %22, %c0_7] : memref<9x8x128xf32, #tpu.memory_space<vmem>>, vector<1x8x128xf32>
    %24 = vector.shape_cast %23 : vector<1x8x128xf32> to vector<8x128xf32>
    %c7 = arith.constant 7 : index
    %25 = arith.index_cast %3 : i32 to index
    %c0_8 = arith.constant 0 : index
    %26 = vector.load %arg1[%c7, %25, %c0_8] : memref<9x8x128xf32, #tpu.memory_space<vmem>>, vector<1x8x128xf32>
    %27 = vector.shape_cast %26 : vector<1x8x128xf32> to vector<8x128xf32>
    %c8 = arith.constant 8 : index
    %28 = arith.index_cast %3 : i32 to index
    %c0_9 = arith.constant 0 : index
    %29 = vector.load %arg1[%c8, %28, %c0_9] : memref<9x8x128xf32, #tpu.memory_space<vmem>>, vector<1x8x128xf32>
    %30 = vector.shape_cast %29 : vector<1x8x128xf32> to vector<8x128xf32>
    %c0_10 = arith.constant 0 : index
    %31 = arith.index_cast %3 : i32 to index
    %c0_11 = arith.constant 0 : index
    %32 = vector.load %arg2[%c0_10, %31, %c0_11] : memref<9x8x128xf32, #tpu.memory_space<vmem>>, vector<1x8x128xf32>
    %33 = vector.shape_cast %32 : vector<1x8x128xf32> to vector<8x128xf32>
    %c1_12 = arith.constant 1 : index
    %34 = arith.index_cast %3 : i32 to index
    %c0_13 = arith.constant 0 : index
    %35 = vector.load %arg2[%c1_12, %34, %c0_13] : memref<9x8x128xf32, #tpu.memory_space<vmem>>, vector<1x8x128xf32>
    %36 = vector.shape_cast %35 : vector<1x8x128xf32> to vector<8x128xf32>
    %c2_14 = arith.constant 2 : index
    %37 = arith.index_cast %3 : i32 to index
    %c0_15 = arith.constant 0 : index
    %38 = vector.load %arg2[%c2_14, %37, %c0_15] : memref<9x8x128xf32, #tpu.memory_space<vmem>>, vector<1x8x128xf32>
    %39 = vector.shape_cast %38 : vector<1x8x128xf32> to vector<8x128xf32>
    %c3_16 = arith.constant 3 : index
    %40 = arith.index_cast %3 : i32 to index
    %c0_17 = arith.constant 0 : index
    %41 = vector.load %arg2[%c3_16, %40, %c0_17] : memref<9x8x128xf32, #tpu.memory_space<vmem>>, vector<1x8x128xf32>
    %42 = vector.shape_cast %41 : vector<1x8x128xf32> to vector<8x128xf32>
    %c4_18 = arith.constant 4 : index
    %43 = arith.index_cast %3 : i32 to index
    %c0_19 = arith.constant 0 : index
    %44 = vector.load %arg2[%c4_18, %43, %c0_19] : memref<9x8x128xf32, #tpu.memory_space<vmem>>, vector<1x8x128xf32>
    %45 = vector.shape_cast %44 : vector<1x8x128xf32> to vector<8x128xf32>
    %c5_20 = arith.constant 5 : index
    %46 = arith.index_cast %3 : i32 to index
    %c0_21 = arith.constant 0 : index
    %47 = vector.load %arg2[%c5_20, %46, %c0_21] : memref<9x8x128xf32, #tpu.memory_space<vmem>>, vector<1x8x128xf32>
    %48 = vector.shape_cast %47 : vector<1x8x128xf32> to vector<8x128xf32>
    %c6_22 = arith.constant 6 : index
    %49 = arith.index_cast %3 : i32 to index
    %c0_23 = arith.constant 0 : index
    %50 = vector.load %arg2[%c6_22, %49, %c0_23] : memref<9x8x128xf32, #tpu.memory_space<vmem>>, vector<1x8x128xf32>
    %51 = vector.shape_cast %50 : vector<1x8x128xf32> to vector<8x128xf32>
    %c7_24 = arith.constant 7 : index
    %52 = arith.index_cast %3 : i32 to index
    %c0_25 = arith.constant 0 : index
    %53 = vector.load %arg2[%c7_24, %52, %c0_25] : memref<9x8x128xf32, #tpu.memory_space<vmem>>, vector<1x8x128xf32>
    %54 = vector.shape_cast %53 : vector<1x8x128xf32> to vector<8x128xf32>
    %c8_26 = arith.constant 8 : index
    %55 = arith.index_cast %3 : i32 to index
    %c0_27 = arith.constant 0 : index
    %56 = vector.load %arg2[%c8_26, %55, %c0_27] : memref<9x8x128xf32, #tpu.memory_space<vmem>>, vector<1x8x128xf32>
    %57 = vector.shape_cast %56 : vector<1x8x128xf32> to vector<8x128xf32>
    %58 = arith.mulf %6, %33 : vector<8x128xf32>
    %59 = arith.mulf %15, %42 : vector<8x128xf32>
    %60 = arith.addf %58, %59 : vector<8x128xf32>
    %61 = arith.mulf %24, %51 : vector<8x128xf32>
    %62 = arith.addf %60, %61 : vector<8x128xf32>
    %63 = arith.mulf %6, %36 : vector<8x128xf32>
    %64 = arith.mulf %15, %45 : vector<8x128xf32>
    %65 = arith.addf %63, %64 : vector<8x128xf32>
    %66 = arith.mulf %24, %54 : vector<8x128xf32>
    %67 = arith.addf %65, %66 : vector<8x128xf32>
    %68 = arith.mulf %9, %33 : vector<8x128xf32>
    %69 = arith.mulf %18, %42 : vector<8x128xf32>
    %70 = arith.addf %68, %69 : vector<8x128xf32>
    %71 = arith.mulf %27, %51 : vector<8x128xf32>
    %72 = arith.addf %70, %71 : vector<8x128xf32>
    %73 = arith.mulf %9, %36 : vector<8x128xf32>
    %74 = arith.mulf %18, %45 : vector<8x128xf32>
    %75 = arith.addf %73, %74 : vector<8x128xf32>
    %76 = arith.mulf %27, %54 : vector<8x128xf32>
    %77 = arith.addf %75, %76 : vector<8x128xf32>
    %78 = arith.mulf %12, %39 : vector<8x128xf32>
    %79 = arith.mulf %21, %48 : vector<8x128xf32>
    %80 = arith.addf %78, %79 : vector<8x128xf32>
    %81 = arith.mulf %30, %57 : vector<8x128xf32>
    %82 = arith.addf %80, %81 : vector<8x128xf32>
    %83 = arith.addf %62, %77 : vector<8x128xf32>
    %84 = arith.addf %83, %82 : vector<8x128xf32>
    %cst = arith.constant 0.000000e+00 : f32
    %85 = vector.broadcast %cst : f32 to vector<8x128xf32>
    %86 = arith.subf %85, %62 : vector<8x128xf32>
    %cst_28 = arith.constant 0.000000e+00 : f32
    %87 = vector.broadcast %cst_28 : f32 to vector<8x128xf32>
    %88 = arith.subf %87, %77 : vector<8x128xf32>
    %89 = arith.addf %86, %88 : vector<8x128xf32>
    %90 = arith.addf %89, %82 : vector<8x128xf32>
    %cst_29 = arith.constant 0.000000e+00 : f32
    %91 = vector.broadcast %cst_29 : f32 to vector<8x128xf32>
    %92 = arith.subf %91, %67 : vector<8x128xf32>
    %93 = arith.addf %92, %72 : vector<8x128xf32>
    %94 = arith.addf %93, %82 : vector<8x128xf32>
    %cst_30 = arith.constant 0.000000e+00 : f32
    %95 = vector.broadcast %cst_30 : f32 to vector<8x128xf32>
    %96 = arith.subf %95, %72 : vector<8x128xf32>
    %97 = arith.addf %67, %96 : vector<8x128xf32>
    %98 = arith.addf %97, %82 : vector<8x128xf32>
    %99 = arith.maximumf %84, %90 : vector<8x128xf32>
    %100 = arith.maximumf %84, %94 : vector<8x128xf32>
    %101 = arith.maximumf %100, %90 : vector<8x128xf32>
    %102 = arith.maximumf %101, %98 : vector<8x128xf32>
    %103 = arith.index_cast %3 : i32 to index
    %c0_31 = arith.constant 0 : index
    %104 = vector.load %arg3[%103, %c0_31] : memref<8x128xi32, #tpu.memory_space<vmem>>, vector<8x128xi32>
    %c1_i32_32 = arith.constant 1 : i32
    %105 = vector.broadcast %c1_i32_32 : i32 to vector<8x128xi32>
    %106 = arith.cmpi eq, %104, %105 : vector<8x128xi32>
    %107 = arith.select %106, %99, %84 : vector<8x128xi1>, vector<8x128xf32>
    %c2_i32 = arith.constant 2 : i32
    %108 = vector.broadcast %c2_i32 : i32 to vector<8x128xi32>
    %109 = arith.cmpi eq, %104, %108 : vector<8x128xi32>
    %110 = arith.select %109, %102, %107 : vector<8x128xi1>, vector<8x128xf32>
    %cst_33 = arith.constant 5.000000e-01 : f32
    %111 = vector.broadcast %cst_33 : f32 to vector<8x128xf32>
    %112 = arith.mulf %111, %110 : vector<8x128xf32>
    %cst_34 = arith.constant 5.000000e-01 : f32
    %113 = vector.broadcast %cst_34 : f32 to vector<8x128xf32>
    %114 = arith.subf %112, %113 : vector<8x128xf32>
    %cst_35 = arith.constant -0.999998986 : f32
    %cst_36 = arith.constant 0.999998986 : f32
    %115 = vector.broadcast %cst_35 : f32 to vector<8x128xf32>
    %116 = arith.maximumf %115, %114 : vector<8x128xf32>
    %117 = vector.broadcast %cst_36 : f32 to vector<8x128xf32>
    %118 = arith.minimumf %117, %116 : vector<8x128xf32>
    %119 = arith.index_cast %3 : i32 to index
    %c0_37 = arith.constant 0 : index
    %120 = vector.load %arg4[%119, %c0_37] : memref<8x128xf32, #tpu.memory_space<vmem>>, vector<8x128xf32>
    tpu.vector_store %arg4[%119, %c0_37], %118 {strides = array<i32>} : memref<8x128xf32, #tpu.memory_space<vmem>>, vector<8x128xf32>,
    %c1_i32_38 = arith.constant 1 : i32
    return
  }
  func.func @transform_0(%arg0: i32) -> (i32, i32, i32) {
    %c0_i32 = arith.constant 0 : i32
    %c0_i32_0 = arith.constant 0 : i32
    %c0_i32_1 = arith.constant 0 : i32
    return %c0_i32, %arg0, %c0_i32_0 : i32, i32, i32
  }
  func.func @transform_1(%arg0: i32) -> (i32, i32, i32) {
    %c0_i32 = arith.constant 0 : i32
    %c0_i32_0 = arith.constant 0 : i32
    %c0_i32_1 = arith.constant 0 : i32
    return %c0_i32, %arg0, %c0_i32_0 : i32, i32, i32
  }
  func.func @transform_2(%arg0: i32) -> (i32, i32) {
    %c0_i32 = arith.constant 0 : i32
    %c0_i32_0 = arith.constant 0 : i32
    return %arg0, %c0_i32 : i32, i32
  }
  func.func @transform_3(%arg0: i32) -> (i32, i32) {
    %c0_i32 = arith.constant 0 : i32
    %c0_i32_0 = arith.constant 0 : i32
    return %arg0, %c0_i32 : i32, i32
  }
}

</mosaic_0001>

<bundles_post_ra>
// kernel: _forward.1
= control target key start
LH: loop header
LB: loop body
LE: loop exit
PB: predicated region body
PF: predicated region fallthrough
CT: control target
= control target key end

     0   :  { %s225_s0 = inlined_call_operand.vmem [shape: f32[9,8,128], index: 0, kind: input, shape index: {}]   ;;  %s226_s1 = inlined_call_operand.vmem [shape: f32[9,8,128], index: 1, kind: input, shape index: {}]   ;;  %s227_s2 = inlined_call_operand.vmem [shape: s32[8,128], index: 2, kind: input, shape index: {}]   ;;  %s228_s3 = inlined_call_operand.vmem [shape: f32[8,128], index: 3, kind: output, shape index: {}]  }
   0x1   :  { %v14_v0 = vld [vmem:[%s225_s0] sm:$0xff]  ;;  %v127_v1 = vld [vmem:[%s225_s0 + $0x8] sm:$0xff]  ;;  %v129_v2 = vld [vmem:[%s225_s0 + $0x18] sm:$0xff] }
   0x2   :  { %v130_v3 = vld [vmem:[%s225_s0 + $0x20] sm:$0xff]  ;;  %v132_v4 = vld [vmem:[%s225_s0 + $0x30] sm:$0xff]  ;;  %v133_v5 = vld [vmem:[%s225_s0 + $0x38] sm:$0xff] }
   0x3   :  { %v128_v6 = vld [vmem:[%s225_s0 + $0x10] sm:$0xff]  ;;  %v131_v7 = vld [vmem:[%s225_s0 + $0x28] sm:$0xff]  ;;  %v134_v8 = vld [vmem:[%s225_s0 + $0x40] sm:$0xff] }
   0x4   :  { %v39_v9 = vld [vmem:[%s226_s1] sm:$0xff]  ;;  %v135_v10 = vld [vmem:[%s226_s1 + $0x8] sm:$0xff]  ;;  %v136_v11 = vld [vmem:[%s226_s1 + $0x10] sm:$0xff] }
   0x5   :  { %v137_v12 = vld [vmem:[%s226_s1 + $0x18] sm:$0xff]  ;;  %v138_v13 = vld [vmem:[%s226_s1 + $0x20] sm:$0xff]  ;;  %v139_v14 = vld [vmem:[%s226_s1 + $0x28] sm:$0xff]  ;;  %v56_v15 = vmul.f32 %v39_v9, %v14_v0  ;;  %v61_v16 = vmul.f32 %v135_v10, %v14_v0  ;;  %v66_v17 = vmul.f32 %v127_v1, %v39_v9  ;;  %v71_v18 = vmul.f32 %v135_v10, %v127_v1 }
   0x6   :  { %v140_v19 = vld [vmem:[%s226_s1 + $0x30] sm:$0xff]  ;;  %v141_v20 = vld [vmem:[%s226_s1 + $0x38] sm:$0xff]  ;;  %v142_v21 = vld [vmem:[%s226_s1 + $0x40] sm:$0xff]  ;;  %v57_v22 = vmul.f32 %v137_v12, %v129_v2  ;;  %v62_v23 = vmul.f32 %v138_v13, %v129_v2  ;;  %v67_v24 = vmul.f32 %v137_v12, %v130_v3  ;;  %v72_v25 = vmul.f32 %v138_v13, %v130_v3 }
   0x7   :  { %v59_v26 = vmul.f32 %v140_v19, %v132_v4  ;;  %v64_v27 = vmul.f32 %v141_v20, %v132_v4  ;;  %v69_v28 = vmul.f32 %v140_v19, %v133_v5  ;;  %v74_v29 = vmul.f32 %v141_v20, %v133_v5  ;;  %v97_v52 = vld [vmem:[%s227_s2] sm:$0xff] }
   0x8   :  { %v58_v30 = vadd.f32 %v57_v22, %v56_v15  ;;  %v63_v31 = vadd.f32 %v62_v23, %v61_v16  ;;  %v68_v32 = vadd.f32 %v67_v24, %v66_v17  ;;  %v73_v33 = vadd.f32 %v72_v25, %v71_v18 }
   0x9   :  { %v76_v34 = vmul.f32 %v136_v11, %v128_v6  ;;  %v77_v35 = vmul.f32 %v139_v14, %v131_v7  ;;  %v79_v36 = vmul.f32 %v142_v21, %v134_v8  ;;  %vm98_vm0 = vcmp.eq.s32.totalorder %v97_v52, 1 }
   0xa   :  { %v60_v37 = vadd.f32 %v59_v26, %v58_v30  ;;  %v65_v38 = vadd.f32 %v64_v27, %v63_v31  ;;  %v70_v39 = vadd.f32 %v69_v28, %v68_v32  ;;  %v75_v40 = vadd.f32 %v74_v29, %v73_v33 }
   0xb   :  { %v78_v41 = vadd.f32 %v77_v35, %v76_v34  ;;  %vm100_vm1 = vcmp.eq.s32.totalorder %v97_v52, 2 }
   0xc   :  { %v81_v42 = vadd.f32 %v75_v40, %v60_v37  ;;  %v83_v43 = vsub.f32 0.0, %v60_v37  ;;  %v84_v44 = vsub.f32 0.0, %v75_v40  ;;  %v87_v45 = vsub.f32 0.0, %v65_v38 }
   0xd   :  { %v80_v46 = vadd.f32 %v79_v36, %v78_v41  ;;  %v90_v47 = vsub.f32 0.0, %v70_v39 }
   0xe   :  { %v85_v48 = vadd.f32 %v84_v44, %v83_v43  ;;  %v88_v49 = vadd.f32 %v87_v45, %v70_v39 }
   0xf   :  { %v82_v50 = vadd.f32 %v81_v42, %v80_v46  ;;  %v91_v51 = vadd.f32 %v90_v47, %v65_v38 }
  0x10   :  { %v86_v53 = vadd.f32 %v85_v48, %v80_v46  ;;  %v89_v54 = vadd.f32 %v88_v49, %v80_v46 }
  0x11   :  { %v92_v55 = vadd.f32 %v91_v51, %v80_v46 }
  0x12   :  { %v93_v56 = vmax.f32 %v82_v50, %v86_v53  ;;  %v94_v57 = vmax.f32 %v82_v50, %v89_v54 }
  0x14   :  { %v95_v58 = vmax.f32 %v94_v57, %v86_v53  ;;  %v99_v59 = vsel %vm98_vm0, %v93_v56, %v82_v50 }
  0x16   :  { %v96_v60 = vmax.f32 %v95_v58, %v92_v55 }
  0x18   :  { %v101_v61 = vsel %vm100_vm1, %v96_v60, %v99_v59 }
  0x19   :  { %v102_v62 = vmul.f32 0.5, %v101_v61 }
  0x1b   :  { %v143_v63 = vadd.f32 -0.5, %v102_v62 }
  0x1d   :  { %v144_v0 = vclamps-f32 %v143_v63, 0.999999 }
  0x1f   :  { %106 = vst [vmem:[%s228_s3] sm:$0xff] %v144_v0 }

</bundles_post_ra>
